<compile_context>
chip_gen: v7x
topology: tpu7x:2x2x1
jax: 0.10.0
libtpu: 0.0.40
codegen_flags: <defaults>
</compile_context>

<pallas_src>
import functools

import jax
import jax.numpy as jnp
import numpy as np
from jax.experimental import pallas as pl
from jax.experimental.pallas import tpu as pltpu


# ----------------------------------------------------------------------------------
# Pallas kernel: full BottleneckCSP (n=1) forward for one (batch, pixel-tile) block.
# Layout: channels on sublanes, pixels on lanes.  All weights are (c_out, c_in) bf16
# with the BN scale already folded into their rows; shifts are (c_out, 1) f32 columns.
# ----------------------------------------------------------------------------------
def csp_kernel(
    x_ref,                      # (c1, TPIX)  bf16
    w1_ref, h1_ref,             # cv1 (DP_Conv):        (c_, c1) bf16, (c_, 1) f32
    wm1_ref, hm1_ref,           # Bottleneck.cv1:       (c_, c_) bf16, (c_, 1) f32
    wm2_ref, hm2_ref,           # Bottleneck.cv2:       (c_, c_) bf16, (c_, 1) f32
    w3_ref, hb3_ref,            # cv3 * outer-BN scale: (c_, c_) bf16, (c_, 1) f32
    w2_ref, hb2_ref,            # cv2 * outer-BN scale: (c_, c1) bf16, (c_, 1) f32
    w4a_ref, w4b_ref, h4_ref,   # cv4 split on concat:  (c2, c_) x2 bf16, (c2, 1) f32
    o_ref,                      # (c2, TPIX)
    *,
    act_dtype,                  # bf16 on v6e/v7x (bf16 VPU/EUP), f32 on v5e
):
    x = x_ref[...]                                              # bf16 MXU operand

    def mm(w_ref, v):
        return jnp.dot(w_ref[...], v, preferred_element_type=jnp.float32)

    def conv_bn_silu(w_ref, h_ref, v):
        # BN scale folded into W rows; shift added on the f32 accumulator.
        y = (mm(w_ref, v) + h_ref[...]).astype(act_dtype)
        return (y * jax.nn.sigmoid(y)).astype(jnp.bfloat16)    # carry bf16

    def conv_bn_leaky(w_ref, h_ref, v):
        z = (mm(w_ref, v) + h_ref[...]).astype(act_dtype)
        return jnp.where(z > 0, z, 0.1 * z).astype(jnp.bfloat16)

    # cv1
    t = conv_bn_silu(w1_ref, h1_ref, x)                         # (c_, TPIX) bf16
    # m = Bottleneck(c_, c_, shortcut=True, e=1.0):  t + cv2(cv1(t))
    u = conv_bn_silu(wm1_ref, hm1_ref, t)
    u = conv_bn_silu(wm2_ref, hm2_ref, u)
    t = t + u

    # y1 = cv3(m(cv1(x))),  y2 = cv2(x)  (bias-free 1x1 convs); outer BN scale is
    # folded into W3 / W2 rows, shifts added here; LeakyReLU(0.1) per half.  The
    # channel concat is avoided by splitting cv4's weight on its input axis.
    z1 = conv_bn_leaky(w3_ref, hb3_ref, t)
    z2 = conv_bn_leaky(w2_ref, hb2_ref, x)

    # cv4:  cat(z1, z2) @ W4^T == W4a @ z1 + W4b @ z2   (cv4 BN scale folded in)
    o = mm(w4a_ref, z1) + mm(w4b_ref, z2) + h4_ref[...]
    o = o.astype(act_dtype)
    o = o * jax.nn.sigmoid(o)                                   # cv4 SiLU
    o_ref[...] = o.astype(o_ref.dtype)


# ----------------------------------------------------------------------------------
# One-time parameter preparation (hoisted out of the per-forward wrapper):
# eval-mode BN fold into weight rows + per-channel shifts, bf16 weight cast,
# cv4 weight split along the concat axis.
# ----------------------------------------------------------------------------------
def _fold_bn(conv_b, gamma, beta, mean, var, eps=1e-5):
    scale = gamma / jnp.sqrt(var + eps)
    shift = beta + (conv_b - mean) * scale
    return scale, shift


def prepare_csp_operands(P, eps=1e-5):
    c_ = P["cv1_w"].shape[0]
    col = lambda v: v.reshape(-1, 1).astype(jnp.float32)
    wfold = lambda w, s: (w * s[:, None]).astype(jnp.bfloat16)

    s1, h1 = _fold_bn(P["cv1_b"], *P["cv1_bn"], eps=eps)
    sm1, hm1 = _fold_bn(P["m_cv1_b"], *P["m_cv1_bn"], eps=eps)
    sm2, hm2 = _fold_bn(P["m_cv2_b"], *P["m_cv2_bn"], eps=eps)
    s4, h4 = _fold_bn(P["cv4_b"], *P["cv4_bn"], eps=eps)
    # outer BN on cat(y1, y2) — no conv bias; split into the two concat halves
    bn_s, bn_h = _fold_bn(jnp.zeros(2 * c_, jnp.float32), *P["bn"], eps=eps)

    w4 = P["cv4_w"]                                   # (c2, 2*c_)
    return (
        wfold(P["cv1_w"], s1), col(h1),
        wfold(P["m_cv1_w"], sm1), col(hm1),
        wfold(P["m_cv2_w"], sm2), col(hm2),
        wfold(P["cv3_w"], bn_s[:c_]), col(bn_h[:c_]),
        wfold(P["cv2_w"], bn_s[c_:]), col(bn_h[c_:]),
        wfold(w4[:, :c_], s4), wfold(w4[:, c_:], s4), col(h4),
    )


def _default_act_dtype():
    # bf16 VPU/EUP on v6e/v7x; v5e and older do elementwise math in f32.
    try:
        kind = jax.devices()[0].device_kind.lower()
    except Exception:
        return jnp.float32
    if any(tag in kind for tag in ("v2", "v3", "v4", "v5")):
        return jnp.float32
    return jnp.bfloat16


def _round_up(x, m):
    return ((x + m - 1) // m) * m


# ----------------------------------------------------------------------------------
# Forward wrapper: free NCHW reshape, fused pad+cast, pallas_call with batch+pixel grid.
# ----------------------------------------------------------------------------------
def bottleneck_csp_pallas(x_nchw, ops, *, tile_pix=1024, out_dtype=jnp.bfloat16,
                          act_dtype=None):
    if act_dtype is None:
        act_dtype = _default_act_dtype()

    N, c1, H, W = x_nchw.shape
    c2 = ops[-1].shape[0]                              # h4 is (c2, 1)

    HW = H * W
    # Lane tile: multiple of 128, clamped so small images don't over-pad.
    tile = min(_round_up(tile_pix, 128), _round_up(HW, 128))
    n_tiles = pl.cdiv(HW, tile)
    hw_pad = n_tiles * tile
    # NOTE(v7x): total grid steps = N * n_tiles; keep it >= 2 (ideally even, >= 8 at
    # production sizes) so both TensorCores get work.  Batch axis already provides >= 2.

    # (N, c1, H, W) -> (N, c1, HW) is a free reshape (no transpose).  The pixel-tail
    # pad fuses with the bf16 cast under jit, so the only extra HBM pass is the cast.
    x3d = x_nchw.reshape(N, c1, HW)
    if hw_pad != HW:
        x3d = jnp.pad(x3d, ((0, 0), (0, 0), (0, hw_pad - HW)))
    x3d = x3d.astype(jnp.bfloat16)

    kernel = functools.partial(csp_kernel, act_dtype=act_dtype)

    def const_spec(a):
        # Resident constants: single buffer (default double-buffering is wasted VMEM).
        return pl.BlockSpec(a.shape, lambda b, i: (0, 0),
                            pipeline_mode=pl.Buffered(1))

    in_specs = [pl.BlockSpec((None, c1, tile), lambda b, i: (b, 0, i))]
    in_specs += [const_spec(a) for a in ops]

    out3d = pl.pallas_call(
        kernel,
        out_shape=jax.ShapeDtypeStruct((N, c2, hw_pad), out_dtype),
        grid_spec=pltpu.PrefetchScalarGridSpec(
            num_scalar_prefetch=0,
            grid=(N, n_tiles),
            in_specs=in_specs,
            out_specs=pl.BlockSpec((None, c2, tile), lambda b, i: (b, 0, i)),
        ),
        compiler_params=pltpu.CompilerParams(
            dimension_semantics=("parallel", "parallel"),
            # Above v5e/v6e scoped defaults, under v7x's 64 MiB physical VMEM.
            vmem_limit_bytes=48 * 1024 * 1024,
        ),
    )(x3d, *ops)

    if hw_pad != HW:
        out3d = out3d[:, :, :HW]                       # drop pixel-axis padding
    return out3d.reshape(N, c2, H, W)                  # free reshape, no transpose


# ----------------------------------------------------------------------------------
# Pure-JAX reference (NCHW, mirrors the PyTorch module in eval mode).
# ----------------------------------------------------------------------------------
def bottleneck_csp_ref(x, P, eps=1e-5):
    hp = jax.lax.Precision.HIGHEST

    def conv1x1(v, w, b=None):
        y = jnp.einsum("nchw,oc->nohw", v, w, precision=hp)
        if b is not None:
            y = y + b[None, :, None, None]
        return y

    def bn(v, params):
        g, beta, mu, var = params
        return ((v - mu[None, :, None, None])
                / jnp.sqrt(var[None, :, None, None] + eps)
                * g[None, :, None, None] + beta[None, :, None, None])

    silu = lambda v: v * jax.nn.sigmoid(v)
    leaky = lambda v: jnp.where(v > 0, v, 0.1 * v)

    t = silu(bn(conv1x1(x, P["cv1_w"], P["cv1_b"]), P["cv1_bn"]))
    u = silu(bn(conv1x1(t, P["m_cv1_w"], P["m_cv1_b"]), P["m_cv1_bn"]))
    u = silu(bn(conv1x1(u, P["m_cv2_w"], P["m_cv2_b"]), P["m_cv2_bn"]))
    t = t + u
    y1 = conv1x1(t, P["cv3_w"])
    y2 = conv1x1(x, P["cv2_w"])
    z = leaky(bn(jnp.concatenate([y1, y2], axis=1), P["bn"]))
    return silu(bn(conv1x1(z, P["cv4_w"], P["cv4_b"]), P["cv4_bn"]))


# ----------------------------------------------------------------------------------
# Deterministic parameter init + run.
# ----------------------------------------------------------------------------------
def _bn_init(key, c):
    k1, k2, k3, k4 = jax.random.split(key, 4)
    gamma = 1.0 + 0.1 * jax.random.normal(k1, (c,), jnp.float32)
    beta = 0.1 * jax.random.normal(k2, (c,), jnp.float32)
    mean = 0.1 * jax.random.normal(k3, (c,), jnp.float32)
    var = 0.5 + jax.random.uniform(k4, (c,), jnp.float32)
    return (gamma, beta, mean, var)


def make_params(key, c1, c2, e=0.5):
    c_ = int(c2 * e)
    ks = jax.random.split(key, 16)
    w = lambda k, co, ci: 0.2 * jax.random.normal(k, (co, ci), jnp.float32)
    b = lambda k, co: 0.05 * jax.random.normal(k, (co,), jnp.float32)
    return {
        "cv1_w": w(ks[0], c_, c1), "cv1_b": b(ks[1], c_), "cv1_bn": _bn_init(ks[2], c_),
        "m_cv1_w": w(ks[3], c_, c_), "m_cv1_b": b(ks[4], c_), "m_cv1_bn": _bn_init(ks[5], c_),
        "m_cv2_w": w(ks[6], c_, c_), "m_cv2_b": b(ks[7], c_), "m_cv2_bn": _bn_init(ks[8], c_),
        "cv3_w": w(ks[9], c_, c_),
        "cv2_w": w(ks[10], c_, c1),
        "bn": _bn_init(ks[11], 2 * c_),
        "cv4_w": w(ks[12], c2, 2 * c_), "cv4_b": b(ks[13], c2), "cv4_bn": _bn_init(ks[14], c2),
    }


if __name__ == "__main__":
    key = jax.random.PRNGKey(0)
    kx, kp = jax.random.split(key)

    # H=W=20 makes HW = 400: exercises the clamped lane tile and the padded-tail path;
    # the batch axis gives a 2-step parallel grid.
    N, c1, H, W = 2, 8, 20, 20
    c2 = 8
    x = jax.random.normal(kx, (N, c1, H, W), jnp.float32)
    P = make_params(kp, c1, c2)

    # BN fold + bf16 weight cast done ONCE per model (hoisted out of the forward).
    ops = prepare_csp_operands(P)

    fwd = jax.jit(functools.partial(bottleneck_csp_pallas, tile_pix=1024))
    out = jax.block_until_ready(fwd(x, ops))

    ref = jax.block_until_ready(bottleneck_csp_ref(x, P))
    assert out.shape == (N, c2, H, W)
    # Tolerance accounts for bf16 MXU operands / bf16 intermediates + bf16 output vs.
    # the f32 HIGHEST-precision reference.
    out_f32 = np.asarray(jnp.asarray(out, jnp.float32))
    np.testing.assert_allclose(out_f32, np.asarray(ref), rtol=5e-2, atol=5e-2)

    print("KERNEL_OK")
</pallas_src>

<mosaic_0001>
module attributes {stable_mosaic.version = 11 : i64} {
  func.func @csp_kernel(%arg0: i32, %arg1: i32, %arg2: memref<1x8x512xbf16, #tpu.memory_space<vmem>>, %arg3: memref<4x8xbf16, #tpu.memory_space<vmem>>, %arg4: memref<4x1xf32, #tpu.memory_space<vmem>>, %arg5: memref<4x4xbf16, #tpu.memory_space<vmem>>, %arg6: memref<4x1xf32, #tpu.memory_space<vmem>>, %arg7: memref<4x4xbf16, #tpu.memory_space<vmem>>, %arg8: memref<4x1xf32, #tpu.memory_space<vmem>>, %arg9: memref<4x4xbf16, #tpu.memory_space<vmem>>, %arg10: memref<4x1xf32, #tpu.memory_space<vmem>>, %arg11: memref<4x8xbf16, #tpu.memory_space<vmem>>, %arg12: memref<4x1xf32, #tpu.memory_space<vmem>>, %arg13: memref<8x4xbf16, #tpu.memory_space<vmem>>, %arg14: memref<8x4xbf16, #tpu.memory_space<vmem>>, %arg15: memref<8x1xf32, #tpu.memory_space<vmem>>, %arg16: memref<1x8x512xbf16, #tpu.memory_space<vmem>>) attributes {dimension_semantics = [#tpu.dimension_semantics<parallel>, #tpu.dimension_semantics<parallel>], iteration_bounds = array<i64: 2, 1>, scalar_prefetch = 0 : i64, scratch_operands = 0 : i64, tpu.core_type = #tpu.core_type<tc>, window_params = [{transform_indices = @transform_0, window_bounds = array<i64: 1, 8, 512>}, {pipeline_mode = #tpu.pipeline_mode<synchronous>, transform_indices = @transform_1, window_bounds = array<i64: 4, 8>}, {pipeline_mode = #tpu.pipeline_mode<synchronous>, transform_indices = @transform_2, window_bounds = array<i64: 4, 1>}, {pipeline_mode = #tpu.pipeline_mode<synchronous>, transform_indices = @transform_3, window_bounds = array<i64: 4, 4>}, {pipeline_mode = #tpu.pipeline_mode<synchronous>, transform_indices = @transform_4, window_bounds = array<i64: 4, 1>}, {pipeline_mode = #tpu.pipeline_mode<synchronous>, transform_indices = @transform_5, window_bounds = array<i64: 4, 4>}, {pipeline_mode = #tpu.pipeline_mode<synchronous>, transform_indices = @transform_6, window_bounds = array<i64: 4, 1>}, {pipeline_mode = #tpu.pipeline_mode<synchronous>, transform_indices = @transform_7, window_bounds = array<i64: 4, 4>}, {pipeline_mode = #tpu.pipeline_mode<synchronous>, transform_indices = @transform_8, window_bounds = array<i64: 4, 1>}, {pipeline_mode = #tpu.pipeline_mode<synchronous>, transform_indices = @transform_9, window_bounds = array<i64: 4, 8>}, {pipeline_mode = #tpu.pipeline_mode<synchronous>, transform_indices = @transform_10, window_bounds = array<i64: 4, 1>}, {pipeline_mode = #tpu.pipeline_mode<synchronous>, transform_indices = @transform_11, window_bounds = array<i64: 8, 4>}, {pipeline_mode = #tpu.pipeline_mode<synchronous>, transform_indices = @transform_12, window_bounds = array<i64: 8, 4>}, {pipeline_mode = #tpu.pipeline_mode<synchronous>, transform_indices = @transform_13, window_bounds = array<i64: 8, 1>}, {transform_indices = @transform_14, window_bounds = array<i64: 1, 8, 512>}]} {
    %c0 = arith.constant 0 : index
    %c0_0 = arith.constant 0 : index
    %c0_1 = arith.constant 0 : index
    %0 = vector.load %arg2[%c0, %c0_0, %c0_1] : memref<1x8x512xbf16, #tpu.memory_space<vmem>>, vector<1x8x512xbf16>
    %1 = vector.shape_cast %0 : vector<1x8x512xbf16> to vector<8x512xbf16>
    %c0_2 = arith.constant 0 : index
    %c0_3 = arith.constant 0 : index
    %2 = vector.load %arg3[%c0_2, %c0_3] : memref<4x8xbf16, #tpu.memory_space<vmem>>, vector<4x8xbf16>
    %cst = arith.constant dense<0.000000e+00> : vector<4x512xf32>
    %3 = tpu.matmul %2, %1, %cst {dimension_numbers = #tpu.dot_dimension_numbers<[1], [0], [0], [1], [0, 0, 1, 1], [], []>} : vector<4x8xbf16>, vector<8x512xbf16>, vector<4x512xf32> -> vector<4x512xf32>
    %c0_4 = arith.constant 0 : index
    %c0_5 = arith.constant 0 : index
    %4 = vector.load %arg4[%c0_4, %c0_5] : memref<4x1xf32, #tpu.memory_space<vmem>>, vector<4x1xf32>
    %5 = vector.broadcast %4 : vector<4x1xf32> to vector<4x512xf32>
    %6 = arith.addf %3, %5 : vector<4x512xf32>
    %7 = arith.truncf %6 : vector<4x512xf32> to vector<4x512xbf16>
    %8 = arith.negf %7 : vector<4x512xbf16>
    %9 = math.exp %8 : vector<4x512xbf16>
    %cst_6 = arith.constant 1.000000e+00 : bf16
    %10 = vector.broadcast %cst_6 : bf16 to vector<4x512xbf16>
    %11 = arith.addf %10, %9 : vector<4x512xbf16>
    %12 = arith.divf %10, %11 : vector<4x512xbf16>
    %13 = arith.mulf %7, %12 : vector<4x512xbf16>
    %c0_7 = arith.constant 0 : index
    %c0_8 = arith.constant 0 : index
    %14 = vector.load %arg5[%c0_7, %c0_8] : memref<4x4xbf16, #tpu.memory_space<vmem>>, vector<4x4xbf16>
    %cst_9 = arith.constant dense<0.000000e+00> : vector<4x512xf32>
    %15 = tpu.matmul %14, %13, %cst_9 {dimension_numbers = #tpu.dot_dimension_numbers<[1], [0], [0], [1], [0, 0, 1, 1], [], []>} : vector<4x4xbf16>, vector<4x512xbf16>, vector<4x512xf32> -> vector<4x512xf32>
    %c0_10 = arith.constant 0 : index
    %c0_11 = arith.constant 0 : index
    %16 = vector.load %arg6[%c0_10, %c0_11] : memref<4x1xf32, #tpu.memory_space<vmem>>, vector<4x1xf32>
    %17 = vector.broadcast %16 : vector<4x1xf32> to vector<4x512xf32>
    %18 = arith.addf %15, %17 : vector<4x512xf32>
    %19 = arith.truncf %18 : vector<4x512xf32> to vector<4x512xbf16>
    %20 = arith.negf %19 : vector<4x512xbf16>
    %21 = math.exp %20 : vector<4x512xbf16>
    %cst_12 = arith.constant 1.000000e+00 : bf16
    %22 = vector.broadcast %cst_12 : bf16 to vector<4x512xbf16>
    %23 = arith.addf %22, %21 : vector<4x512xbf16>
    %24 = arith.divf %22, %23 : vector<4x512xbf16>
    %25 = arith.mulf %19, %24 : vector<4x512xbf16>
    %c0_13 = arith.constant 0 : index
    %c0_14 = arith.constant 0 : index
    %26 = vector.load %arg7[%c0_13, %c0_14] : memref<4x4xbf16, #tpu.memory_space<vmem>>, vector<4x4xbf16>
    %cst_15 = arith.constant dense<0.000000e+00> : vector<4x512xf32>
    %27 = tpu.matmul %26, %25, %cst_15 {dimension_numbers = #tpu.dot_dimension_numbers<[1], [0], [0], [1], [0, 0, 1, 1], [], []>} : vector<4x4xbf16>, vector<4x512xbf16>, vector<4x512xf32> -> vector<4x512xf32>
    %c0_16 = arith.constant 0 : index
    %c0_17 = arith.constant 0 : index
    %28 = vector.load %arg8[%c0_16, %c0_17] : memref<4x1xf32, #tpu.memory_space<vmem>>, vector<4x1xf32>
    %29 = vector.broadcast %28 : vector<4x1xf32> to vector<4x512xf32>
    %30 = arith.addf %27, %29 : vector<4x512xf32>
    %31 = arith.truncf %30 : vector<4x512xf32> to vector<4x512xbf16>
    %32 = arith.negf %31 : vector<4x512xbf16>
    %33 = math.exp %32 : vector<4x512xbf16>
    %cst_18 = arith.constant 1.000000e+00 : bf16
    %34 = vector.broadcast %cst_18 : bf16 to vector<4x512xbf16>
    %35 = arith.addf %34, %33 : vector<4x512xbf16>
    %36 = arith.divf %34, %35 : vector<4x512xbf16>
    %37 = arith.mulf %31, %36 : vector<4x512xbf16>
    %38 = arith.addf %13, %37 : vector<4x512xbf16>
    %c0_19 = arith.constant 0 : index
    %c0_20 = arith.constant 0 : index
    %39 = vector.load %arg9[%c0_19, %c0_20] : memref<4x4xbf16, #tpu.memory_space<vmem>>, vector<4x4xbf16>
    %cst_21 = arith.constant dense<0.000000e+00> : vector<4x512xf32>
    %40 = tpu.matmul %39, %38, %cst_21 {dimension_numbers = #tpu.dot_dimension_numbers<[1], [0], [0], [1], [0, 0, 1, 1], [], []>} : vector<4x4xbf16>, vector<4x512xbf16>, vector<4x512xf32> -> vector<4x512xf32>
    %c0_22 = arith.constant 0 : index
    %c0_23 = arith.constant 0 : index
    %41 = vector.load %arg10[%c0_22, %c0_23] : memref<4x1xf32, #tpu.memory_space<vmem>>, vector<4x1xf32>
    %42 = vector.broadcast %41 : vector<4x1xf32> to vector<4x512xf32>
    %43 = arith.addf %40, %42 : vector<4x512xf32>
    %44 = arith.truncf %43 : vector<4x512xf32> to vector<4x512xbf16>
    %cst_24 = arith.constant 0.000000e+00 : bf16
    %45 = vector.broadcast %cst_24 : bf16 to vector<4x512xbf16>
    %46 = arith.cmpf ogt, %44, %45 : vector<4x512xbf16>
    %cst_25 = arith.constant 1.000980e-01 : bf16
    %47 = vector.broadcast %cst_25 : bf16 to vector<4x512xbf16>
    %48 = arith.mulf %47, %44 : vector<4x512xbf16>
    %49 = arith.select %46, %44, %48 : vector<4x512xi1>, vector<4x512xbf16>
    %c0_26 = arith.constant 0 : index
    %c0_27 = arith.constant 0 : index
    %50 = vector.load %arg11[%c0_26, %c0_27] : memref<4x8xbf16, #tpu.memory_space<vmem>>, vector<4x8xbf16>
    %cst_28 = arith.constant dense<0.000000e+00> : vector<4x512xf32>
    %51 = tpu.matmul %50, %1, %cst_28 {dimension_numbers = #tpu.dot_dimension_numbers<[1], [0], [0], [1], [0, 0, 1, 1], [], []>} : vector<4x8xbf16>, vector<8x512xbf16>, vector<4x512xf32> -> vector<4x512xf32>
    %c0_29 = arith.constant 0 : index
    %c0_30 = arith.constant 0 : index
    %52 = vector.load %arg12[%c0_29, %c0_30] : memref<4x1xf32, #tpu.memory_space<vmem>>, vector<4x1xf32>
    %53 = vector.broadcast %52 : vector<4x1xf32> to vector<4x512xf32>
    %54 = arith.addf %51, %53 : vector<4x512xf32>
    %55 = arith.truncf %54 : vector<4x512xf32> to vector<4x512xbf16>
    %cst_31 = arith.constant 0.000000e+00 : bf16
    %56 = vector.broadcast %cst_31 : bf16 to vector<4x512xbf16>
    %57 = arith.cmpf ogt, %55, %56 : vector<4x512xbf16>
    %cst_32 = arith.constant 1.000980e-01 : bf16
    %58 = vector.broadcast %cst_32 : bf16 to vector<4x512xbf16>
    %59 = arith.mulf %58, %55 : vector<4x512xbf16>
    %60 = arith.select %57, %55, %59 : vector<4x512xi1>, vector<4x512xbf16>
    %c0_33 = arith.constant 0 : index
    %c0_34 = arith.constant 0 : index
    %61 = vector.load %arg13[%c0_33, %c0_34] : memref<8x4xbf16, #tpu.memory_space<vmem>>, vector<8x4xbf16>
    %cst_35 = arith.constant dense<0.000000e+00> : vector<8x512xf32>
    %62 = tpu.matmul %61, %49, %cst_35 {dimension_numbers = #tpu.dot_dimension_numbers<[1], [0], [0], [1], [0, 0, 1, 1], [], []>} : vector<8x4xbf16>, vector<4x512xbf16>, vector<8x512xf32> -> vector<8x512xf32>
    %c0_36 = arith.constant 0 : index
    %c0_37 = arith.constant 0 : index
    %63 = vector.load %arg14[%c0_36, %c0_37] : memref<8x4xbf16, #tpu.memory_space<vmem>>, vector<8x4xbf16>
    %cst_38 = arith.constant dense<0.000000e+00> : vector<8x512xf32>
    %64 = tpu.matmul %63, %60, %cst_38 {dimension_numbers = #tpu.dot_dimension_numbers<[1], [0], [0], [1], [0, 0, 1, 1], [], []>} : vector<8x4xbf16>, vector<4x512xbf16>, vector<8x512xf32> -> vector<8x512xf32>
    %65 = arith.addf %62, %64 : vector<8x512xf32>
    %c0_39 = arith.constant 0 : index
    %c0_40 = arith.constant 0 : index
    %66 = vector.load %arg15[%c0_39, %c0_40] : memref<8x1xf32, #tpu.memory_space<vmem>>, vector<8x1xf32>
    %67 = vector.broadcast %66 : vector<8x1xf32> to vector<8x512xf32>
    %68 = arith.addf %65, %67 : vector<8x512xf32>
    %69 = arith.truncf %68 : vector<8x512xf32> to vector<8x512xbf16>
    %70 = arith.negf %69 : vector<8x512xbf16>
    %71 = math.exp %70 : vector<8x512xbf16>
    %cst_41 = arith.constant 1.000000e+00 : bf16
    %72 = vector.broadcast %cst_41 : bf16 to vector<8x512xbf16>
    %73 = arith.addf %72, %71 : vector<8x512xbf16>
    %74 = arith.divf %72, %73 : vector<8x512xbf16>
    %75 = arith.mulf %69, %74 : vector<8x512xbf16>
    %c0_42 = arith.constant 0 : index
    %c0_43 = arith.constant 0 : index
    %c0_44 = arith.constant 0 : index
    %76 = vector.load %arg16[%c0_42, %c0_43, %c0_44] : memref<1x8x512xbf16, #tpu.memory_space<vmem>>, vector<1x8x512xbf16>
    %77 = vector.shape_cast %76 : vector<1x8x512xbf16> to vector<8x512xbf16>
    %78 = vector.shape_cast %75 : vector<8x512xbf16> to vector<1x8x512xbf16>
    tpu.vector_store %arg16[%c0_42, %c0_43, %c0_44], %78 {strides = array<i32>} : memref<1x8x512xbf16, #tpu.memory_space<vmem>>, vector<1x8x512xbf16>,
    return
  }
  func.func @transform_0(%arg0: i32, %arg1: i32) -> (i32, i32, i32) {
    %c0_i32 = arith.constant 0 : i32
    %c0_i32_0 = arith.constant 0 : i32
    return %arg0, %c0_i32, %arg1 : i32, i32, i32
  }
  func.func @transform_1(%arg0: i32, %arg1: i32) -> (i32, i32) {
    %c0_i32 = arith.constant 0 : i32
    %c0_i32_0 = arith.constant 0 : i32
    %c0_i32_1 = arith.constant 0 : i32
    return %c0_i32, %c0_i32_0 : i32, i32
  }
  func.func @transform_2(%arg0: i32, %arg1: i32) -> (i32, i32) {
    %c0_i32 = arith.constant 0 : i32
    %c0_i32_0 = arith.constant 0 : i32
    %c0_i32_1 = arith.constant 0 : i32
    return %c0_i32, %c0_i32_0 : i32, i32
  }
  func.func @transform_3(%arg0: i32, %arg1: i32) -> (i32, i32) {
    %c0_i32 = arith.constant 0 : i32
    %c0_i32_0 = arith.constant 0 : i32
    %c0_i32_1 = arith.constant 0 : i32
    return %c0_i32, %c0_i32_0 : i32, i32
  }
  func.func @transform_4(%arg0: i32, %arg1: i32) -> (i32, i32) {
    %c0_i32 = arith.constant 0 : i32
    %c0_i32_0 = arith.constant 0 : i32
    %c0_i32_1 = arith.constant 0 : i32
    return %c0_i32, %c0_i32_0 : i32, i32
  }
  func.func @transform_5(%arg0: i32, %arg1: i32) -> (i32, i32) {
    %c0_i32 = arith.constant 0 : i32
    %c0_i32_0 = arith.constant 0 : i32
    %c0_i32_1 = arith.constant 0 : i32
    return %c0_i32, %c0_i32_0 : i32, i32
  }
  func.func @transform_6(%arg0: i32, %arg1: i32) -> (i32, i32) {
    %c0_i32 = arith.constant 0 : i32
    %c0_i32_0 = arith.constant 0 : i32
    %c0_i32_1 = arith.constant 0 : i32
    return %c0_i32, %c0_i32_0 : i32, i32
  }
  func.func @transform_7(%arg0: i32, %arg1: i32) -> (i32, i32) {
    %c0_i32 = arith.constant 0 : i32
    %c0_i32_0 = arith.constant 0 : i32
    %c0_i32_1 = arith.constant 0 : i32
    return %c0_i32, %c0_i32_0 : i32, i32
  }
  func.func @transform_8(%arg0: i32, %arg1: i32) -> (i32, i32) {
    %c0_i32 = arith.constant 0 : i32
    %c0_i32_0 = arith.constant 0 : i32
    %c0_i32_1 = arith.constant 0 : i32
    return %c0_i32, %c0_i32_0 : i32, i32
  }
  func.func @transform_9(%arg0: i32, %arg1: i32) -> (i32, i32) {
    %c0_i32 = arith.constant 0 : i32
    %c0_i32_0 = arith.constant 0 : i32
    %c0_i32_1 = arith.constant 0 : i32
    return %c0_i32, %c0_i32_0 : i32, i32
  }
  func.func @transform_10(%arg0: i32, %arg1: i32) -> (i32, i32) {
    %c0_i32 = arith.constant 0 : i32
    %c0_i32_0 = arith.constant 0 : i32
    %c0_i32_1 = arith.constant 0 : i32
    return %c0_i32, %c0_i32_0 : i32, i32
  }
  func.func @transform_11(%arg0: i32, %arg1: i32) -> (i32, i32) {
    %c0_i32 = arith.constant 0 : i32
    %c0_i32_0 = arith.constant 0 : i32
    %c0_i32_1 = arith.constant 0 : i32
    return %c0_i32, %c0_i32_0 : i32, i32
  }
  func.func @transform_12(%arg0: i32, %arg1: i32) -> (i32, i32) {
    %c0_i32 = arith.constant 0 : i32
    %c0_i32_0 = arith.constant 0 : i32
    %c0_i32_1 = arith.constant 0 : i32
    return %c0_i32, %c0_i32_0 : i32, i32
  }
  func.func @transform_13(%arg0: i32, %arg1: i32) -> (i32, i32) {
    %c0_i32 = arith.constant 0 : i32
    %c0_i32_0 = arith.constant 0 : i32
    %c0_i32_1 = arith.constant 0 : i32
    return %c0_i32, %c0_i32_0 : i32, i32
  }
  func.func @transform_14(%arg0: i32, %arg1: i32) -> (i32, i32, i32) {
    %c0_i32 = arith.constant 0 : i32
    %c0_i32_0 = arith.constant 0 : i32
    return %arg0, %c0_i32, %arg1 : i32, i32, i32
  }
}

</mosaic_0001>

<bundles_post_ra>
// kernel: bottleneck_csp_pallas.1
= control target key start
LH: loop header
LB: loop body
LE: loop exit
PB: predicated region body
PF: predicated region fallthrough
CT: control target
= control target key end

     0   :  { %s1779_s29 = smov 0   ;;  %s1781_s30 = smov 0   ;;  %s1949_s0 = inlined_call_operand.vmem [shape: bf16[2,8,512], index: 0, kind: input, shape index: {}]   ;;  %s1950_s1 = inlined_call_operand.vmem [shape: bf16[4,8], index: 1, kind: input, shape index: {}]   ;;  %s1951_s2 = inlined_call_operand.vmem [shape: f32[4,1], index: 2, kind: input, shape index: {}]   ;;  %s1952_s3 = inlined_call_operand.vmem [shape: bf16[4,4], index: 3, kind: input, shape index: {}]   ;;  %s1953_s4 = inlined_call_operand.vmem [shape: f32[4,1], index: 4, kind: input, shape index: {}]   ;;  %s1954_s5 = inlined_call_operand.vmem [shape: bf16[4,4], index: 5, kind: input, shape index: {}]   ;;  %s1955_s6 = inlined_call_operand.vmem [shape: f32[4,1], index: 6, kind: input, shape index: {}]   ;;  %s1956_s7 = inlined_call_operand.vmem [shape: bf16[4,4], index: 7, kind: input, shape index: {}]   ;;  %s1957_s8 = inlined_call_operand.vmem [shape: f32[4,1], index: 8, kind: input, shape index: {}]   ;;  %s1958_s9 = inlined_call_operand.vmem [shape: bf16[4,8], index: 9, kind: input, shape index: {}]   ;;  %s1959_s10 = inlined_call_operand.vmem [shape: f32[4,1], index: 10, kind: input, shape index: {}]   ;;  %s1960_s11 = inlined_call_operand.vmem [shape: bf16[8,4], index: 11, kind: input, shape index: {}]   ;;  %s1961_s12 = inlined_call_operand.vmem [shape: bf16[8,4], index: 12, kind: input, shape index: {}]   ;;  %s1962_s13 = inlined_call_operand.vmem [shape: f32[8,1], index: 13, kind: input, shape index: {}]   ;;  %s1963_s14 = inlined_call_operand.vmem [shape: bf16[2,8,512], index: 14, kind: output, shape index: {}]  }
   0x1   :  { %s1783_s15 = smov 0  }
   0x2 LB: > { %s36_s16 = sadd.s32 1, %s1697_s30  ;;  %p1525_p0 = scmp.ge.s32.totalorder %s1701_s15, 1  ;;  %s1701_s15 = sphi %s1783_s15, %s24_s15   ;;  %s1697_s30 = sphi %s1781_s30, %s1965_s30   ;;  %s1693_s29 = sphi %s1779_s29, %s1964_s29  }
   0x3   : > { %p38_p1 = scmp.ge.s32.totalorder %s36_s16, 2  ;;  %p433_p2 = scmp.lt.s32.totalorder %s1701_s15, 3 }
   0x5   : > { %s1967_s16 = smov (%p38_p1, %s36_s16), 0  ;;  %p434_p3 = pnand %p1525_p0, %p433_p2 }
   0x6   : > { %p488_p4 = scmp.lt.s32.totalorder (!%p434_p3), %s1693_s29, 1  ;;  %v1703_v0 = vmov (!%p434_p3), 0   ;;  %v513_v1 = vld [vmem:[%s1951_s2] sm:$0xf] (!%p434_p3)  ;;  %vm533_vm0 = vcmask (!%p434_p3), 1043456   ;;  %vm529_vm1 = vcmask (!%p434_p3), 64512  }
   0x7   : > { %437 = sbr.rel (%p434_p3) target bundleno = 1284 (0x504), region = 76  ;;  %578 = vmatprep.mubr.bf16.mxu0 (!%p434_p3), %v1703_v0  ;;  %619 = vmatprep.mubr.bf16.mxu1 (!%p434_p3), %v1703_v0  ;;  %v665_v2 = vld [vmem:[%s1953_s4] sm:$0xf] (!%p434_p3)  ;;  %vm675_vm2 = vcmask (!%p434_p3), 1041408   ;;  %vm671_vm3 = vcmask (!%p434_p3), 31744  }
   0x8   : > { %1609 = vset.pattern.permute.xlu0 (!%p434_p3), %v1703_v0  ;;  %1610 = vset.pattern.permute.xlu1 (!%p434_p3), %v1703_v0  ;;  %v951_v9 = vld [vmem:[%s1957_s8] sm:$0xf] (!%p434_p3) }
   0x9   : > { %516 = vperm.xlu0 (!%p434_p3), %1609, %v513_v1   ;;  %v512_v12 = vld [vmem:[%s1950_s1] sm:$0x3] (!%p434_p3) }
   0xa   : > { %v664_v56 = vld [vmem:[%s1952_s3] sm:$0x3] (!%p434_p3) }
   0xb   : > { %v807_v57 = vld [vmem:[%s1955_s6] sm:$0xf] (!%p434_p3) }
   0xc   : > { %810 = vperm.xlu1 (!%p434_p3), %1610, %v807_v57   ;;  %v1071_v58 = vld [vmem:[%s1959_s10] sm:$0xf] (!%p434_p3) }
   0xd   : > { %668 = vperm.xlu0 (!%p434_p3), %1609, %v665_v2   ;;  %v1374_v59 = vld [vmem:[%s1962_s13] sm:$0xff] (!%p434_p3) }
   0xe   : > { %s1969_s29 = smov (!%p488_p4, %s1693_s29), 1 }
   0xf   : > { %s1582_s19 = sshll.u32 %s1969_s29, 4 }
  0x10   : > { %s495_s24 = scalar_lea.vmem %s1949_s0, %s1582_s19  ;;  %1074 = vperm.xlu1 %1610, %v1071_v58   ;;  %s505_s27 = scalar_lea.vmem %s1963_s14, %s1582_s19 }
  0x11   : > { %v510_v3 = vld [vmem:[%s495_s24] sm:$0xff]  ;;  %v511_v4 = vld [vmem:[%s495_s24 + $0x8] sm:$0xff]  ;;  %954 = vperm.xlu0 %1609, %v951_v9  }
  0x12   : > { %v1815_v5 = vcombine.high %v510_v3, %v510_v3  ;;  %v1817_v6 = vcombine.high %v511_v4, %v511_v4  ;;  %v1530_v7 = vcombine.low %v510_v3, %v510_v3  ;;  %v1532_v8 = vcombine.low %v511_v4, %v511_v4 }
  0x14   : > { %1534 = vmatprep.subr.msk.bf16.mxu0 %vm533_vm0, %v1815_v5  ;;  %1536 = vmatprep.subr.msk.bf16.mxu1 %vm533_vm0, %v1817_v6  ;;  %v1827_v10 = vsel %vm533_vm0, %v1530_v7, 0  ;;  %v1830_v11 = vsel %vm533_vm0, %v1532_v8, 0 }
  0x15   : > { %547 = vmatpush1.bf16.msra.mxu0 %v1827_v10  ;;  %588 = vmatpush1.bf16.msra.mxu1 %v1830_v11 }
  0x16   : > { %1377 = vperm.xlu1 %1610, %v1374_v59  }
  0x18   : > { %1535 = vmatmul.mubr.msk.bf16.vlgmr.msra.gmra.mrb[0].mxu0 %vm529_vm1, %v512_v12  ;;  %1537 = vmatmul.mubr.msk.bf16.vlgmr.msra.gmra.mrb[0].mxu1 %vm529_vm1, %v512_v12 }
  0x19   : > { %720 = vmatprep.mubr.bf16.mxu0 %v1703_v0  ;;  %761 = vmatprep.mubr.bf16.mxu1 %v1703_v0 }
  0x88   : > { %v517_v13 = vpop.permute.xlu0 %516 }
  0x8c   : > { %v669_v60 = vpop.permute.xlu0 %668 }
  0xeb   : > { %v580_v14 = vpop.f32.mrb[0].mxu0  ;;  %v621_v15 = vpop.f32.mrb[0].mxu1 }
  0xec   : > { %v581_v16 = vadd.f32 %v580_v14, %v517_v13  ;;  %v622_v17 = vadd.f32 %v621_v15, %v517_v13  ;;  %v582_v18 = vpop.f32.mrb[1].mxu0  ;;  %v623_v19 = vpop.f32.mrb[1].mxu1 }
  0xed   : > { %v583_v20 = vadd.f32 %v582_v18, %v517_v13  ;;  %v624_v21 = vadd.f32 %v623_v19, %v517_v13  ;;  %v584_v22 = vpop.f32.mrb[2].mxu0  ;;  %v625_v23 = vpop.f32.mrb[2].mxu1 }
  0xee   : > { %v628_v24 = vpack.c.bf16 %v581_v16, %v581_v16  ;;  %v630_v25 = vpack.c.bf16 %v622_v17, %v622_v17  ;;  %v585_v26 = vpop.f32.mrb[3].mxu0  ;;  %v626_v27 = vpop.f32.mrb[3].mxu1 }
  0xef   : > { %v629_v28 = vpack.c.bf16 %v583_v20, %v583_v20  ;;  %v631_v29 = vpack.c.bf16 %v624_v21, %v624_v21 }
  0xf0   : > { %v1538_v30 = vmul.bf16 3216621497, %v628_v24  ;;  %v1540_v31 = vmul.bf16 3216621497, %v630_v25 }
  0xf1   : > { %v1539_v32 = vmul.bf16 3216621497, %v629_v28  ;;  %v1541_v33 = vmul.bf16 3216621497, %v631_v29 }
  0xf2   : > { %1615 = vpow.bf16 %v1538_v30 }
  0xf3   : > { %1617 = vpow.bf16 %v1540_v31 }
  0xf4   : > { %1619 = vpow.bf16 %v1539_v32 }
  0xf5   : > { %1621 = vpow.bf16 %v1541_v33 }
  0xfd   : > { %v1616_v34 = vpop.eup %1615 }
  0xfe   : > { %v1618_v35 = vpop.eup %1617  ;;  %v648_v36 = vadd.bf16 1065369472, %v1616_v34 }
  0xff   : > { %v1620_v37 = vpop.eup %1619  ;;  %v650_v38 = vadd.bf16 1065369472, %v1618_v35 }
 0x100   : > { %v1622_v39 = vpop.eup %1621  ;;  %1623 = vrcp.bf16 %v648_v36  ;;  %v649_v40 = vadd.bf16 1065369472, %v1620_v37 }
 0x101   : > { %1625 = vrcp.bf16 %v650_v38  ;;  %v651_v41 = vadd.bf16 1065369472, %v1622_v39 }
 0x102   : > { %1627 = vrcp.bf16 %v649_v40 }
 0x103   : > { %1629 = vrcp.bf16 %v651_v41 }
 0x10b   : > { %v1624_v42 = vpop.eup %1623 }
 0x10c   : > { %v1626_v43 = vpop.eup %1625  ;;  %v653_v44 = vmul.bf16 1065369472, %v1624_v42 }
 0x10d   : > { %v1628_v45 = vpop.eup %1627  ;;  %v657_v46 = vmul.bf16 1065369472, %v1626_v43 }
 0x10e   : > { %v1630_v47 = vpop.eup %1629  ;;  %v1841_v48 = vmul.bf16 %v653_v44, %v628_v24  ;;  %v655_v49 = vmul.bf16 1065369472, %v1628_v45  ;;  %v806_v44 = vld [vmem:[%s1954_s5] sm:$0x3]  ;;  %v811_v45 = vpop.permute.xlu1 %810 }
 0x10f   : > { %v1843_v50 = vmul.bf16 %v657_v46, %v630_v25  ;;  %v659_v51 = vmul.bf16 1065369472, %v1630_v47 }
 0x110   : > { %v1845_v52 = vmul.bf16 %v655_v49, %v629_v28  ;;  %v677_v53 = vsel %vm675_vm2, %v1841_v48, 0 }
 0x111   : > { %v1849_v54 = vmul.bf16 %v659_v51, %v631_v29  ;;  %v683_v55 = vsel %vm675_vm2, %v1843_v50, 0 }
 0x112   : > { %1542 = vmatprep.subr.msk.bf16.mxu0 %vm675_vm2, %v1845_v52 }
 0x113   : > { %1544 = vmatprep.subr.msk.bf16.mxu1 %vm675_vm2, %v1849_v54  ;;  %689 = vmatpush1.bf16.msra.mxu0 %v677_v53 }
 0x114   : > { %730 = vmatpush1.bf16.msra.mxu1 %v683_v55 }
 0x116   : > { %1543 = vmatmul.mubr.msk.bf16.vlgmr.msra.gmra.mrb[4].mxu0 %vm671_vm3, %v664_v56 }
 0x117   : > { %1545 = vmatmul.mubr.msk.bf16.vlgmr.msra.gmra.mrb[4].mxu1 %vm671_vm3, %v664_v56  ;;  %860 = vmatprep.mubr.bf16.mxu0 %v1703_v0 }
 0x118   : > { %901 = vmatprep.mubr.bf16.mxu1 %v1703_v0 }
 0x1e9   : > { %v722_v61 = vpop.f32.mrb[4].mxu0 }
 0x1ea   : > { %v723_v62 = vadd.f32 %v722_v61, %v669_v60  ;;  %v763_v63 = vpop.f32.mrb[4].mxu1  ;;  %v724_v1 = vpop.f32.mrb[5].mxu0 }
 0x1eb   : > { %v764_v2 = vadd.f32 %v763_v63, %v669_v60  ;;  %v725_v3 = vadd.f32 %v724_v1, %v669_v60  ;;  %v765_v4 = vpop.f32.mrb[5].mxu1  ;;  %v726_v7 = vpop.f32.mrb[6].mxu0 }
 0x1ec   : > { %v770_v8 = vpack.c.bf16 %v723_v62, %v723_v62  ;;  %v766_v9 = vadd.f32 %v765_v4, %v669_v60  ;;  %v767_v12 = vpop.f32.mrb[6].mxu1  ;;  %v727_v13 = vpop.f32.mrb[7].mxu0 }
 0x1ed   : > { %v772_v14 = vpack.c.bf16 %v764_v2, %v764_v2  ;;  %v771_v15 = vpack.c.bf16 %v725_v3, %v725_v3  ;;  %v768_v16 = vpop.f32.mrb[7].mxu1 }
 0x1ee   : > { %v1546_v17 = vmul.bf16 3216621497, %v770_v8  ;;  %v773_v18 = vpack.c.bf16 %v766_v9, %v766_v9 }
 0x1ef   : > { %v1548_v19 = vmul.bf16 3216621497, %v772_v14  ;;  %v1547_v20 = vmul.bf16 3216621497, %v771_v15 }
 0x1f0   : > { %1631 = vpow.bf16 %v1546_v17  ;;  %v1549_v21 = vmul.bf16 3216621497, %v773_v18 }
 0x1f1   : > { %1633 = vpow.bf16 %v1548_v19 }
 0x1f2   : > { %1635 = vpow.bf16 %v1547_v20 }
 0x1f3   : > { %1637 = vpow.bf16 %v1549_v21 }
 0x1fb   : > { %v1632_v22 = vpop.eup %1631 }
 0x1fc   : > { %v1634_v23 = vpop.eup %1633  ;;  %v790_v24 = vadd.bf16 1065369472, %v1632_v22 }
 0x1fd   : > { %v1636_v25 = vpop.eup %1635  ;;  %v792_v26 = vadd.bf16 1065369472, %v1634_v23 }
 0x1fe   : > { %v1638_v27 = vpop.eup %1637  ;;  %1639 = vrcp.bf16 %v790_v24  ;;  %v791_v28 = vadd.bf16 1065369472, %v1636_v25 }
 0x1ff   : > { %1641 = vrcp.bf16 %v792_v26  ;;  %v793_v29 = vadd.bf16 1065369472, %v1638_v27 }
 0x200   : > { %1643 = vrcp.bf16 %v791_v28 }
 0x201   : > { %1645 = vrcp.bf16 %v793_v29 }
 0x209   : > { %v1640_v30 = vpop.eup %1639 }
 0x20a   : > { %v1642_v31 = vpop.eup %1641  ;;  %v795_v32 = vmul.bf16 1065369472, %v1640_v30 }
 0x20b   : > { %v1644_v33 = vpop.eup %1643  ;;  %v799_v34 = vmul.bf16 1065369472, %v1642_v31 }
 0x20c   : > { %v1646_v35 = vpop.eup %1645  ;;  %v802_v36 = vmul.bf16 %v795_v32, %v770_v8  ;;  %v797_v37 = vmul.bf16 1065369472, %v1644_v33 }
 0x20d   : > { %v804_v38 = vmul.bf16 %v799_v34, %v772_v14  ;;  %v801_v39 = vmul.bf16 1065369472, %v1646_v35 }
 0x20e   : > { %v803_v40 = vmul.bf16 %v797_v37, %v771_v15  ;;  %v817_v41 = vsel %vm675_vm2, %v802_v36, 0 }
 0x20f   : > { %v805_v42 = vmul.bf16 %v801_v39, %v773_v18  ;;  %v823_v43 = vsel %vm675_vm2, %v804_v38, 0 }
 0x210   : > { %1550 = vmatprep.subr.msk.bf16.mxu0 %vm675_vm2, %v803_v40 }
 0x211   : > { %1552 = vmatprep.subr.msk.bf16.mxu1 %vm675_vm2, %v805_v42  ;;  %829 = vmatpush1.bf16.msra.mxu0 %v817_v41 }
 0x212   : > { %870 = vmatpush1.bf16.msra.mxu1 %v823_v43 }
 0x214   : > { %1551 = vmatmul.mubr.msk.bf16.vlgmr.msra.gmra.mrb[8].mxu0 %vm671_vm3, %v806_v44 }
 0x215   : > { %1553 = vmatmul.mubr.msk.bf16.vlgmr.msra.gmra.mrb[8].mxu1 %vm671_vm3, %v806_v44  ;;  %1004 = vmatprep.mubr.bf16.mxu0 %v1703_v0 }
 0x216   : > { %1045 = vmatprep.mubr.bf16.mxu1 %v1703_v0 }
 0x2e7   : > { %v862_v46 = vpop.f32.mrb[8].mxu0 }
 0x2e8   : > { %v863_v47 = vadd.f32 %v862_v46, %v811_v45  ;;  %v903_v49 = vpop.f32.mrb[8].mxu1  ;;  %v864_v51 = vpop.f32.mrb[9].mxu0 }
 0x2e9   : > { %v904_v53 = vadd.f32 %v903_v49, %v811_v45  ;;  %v865_v55 = vadd.f32 %v864_v51, %v811_v45  ;;  %v905_v56 = vpop.f32.mrb[9].mxu1  ;;  %v866_v57 = vpop.f32.mrb[10].mxu0 }
 0x2ea   : > { %v910_v58 = vpack.c.bf16 %v863_v47, %v863_v47  ;;  %v906_v59 = vadd.f32 %v905_v56, %v811_v45  ;;  %v907_v60 = vpop.f32.mrb[10].mxu1  ;;  %v867_v61 = vpop.f32.mrb[11].mxu0 }
 0x2eb   : > { %v912_v62 = vpack.c.bf16 %v904_v53, %v904_v53  ;;  %v911_v63 = vpack.c.bf16 %v865_v55, %v865_v55  ;;  %v908_v1 = vpop.f32.mrb[11].mxu1  ;;  %v1075_v46 = vpop.permute.xlu1 %1074 }
 0x2ec   : > { %v1554_v2 = vmul.bf16 3216621497, %v910_v58  ;;  %v913_v3 = vpack.c.bf16 %v906_v59, %v906_v59 }
 0x2ed   : > { %v1556_v4 = vmul.bf16 3216621497, %v912_v62  ;;  %v1555_v7 = vmul.bf16 3216621497, %v911_v63 }
 0x2ee   : > { %1647 = vpow.bf16 %v1554_v2  ;;  %v1557_v8 = vmul.bf16 3216621497, %v913_v3 }
 0x2ef   : > { %1649 = vpow.bf16 %v1556_v4 }
 0x2f0   : > { %1651 = vpow.bf16 %v1555_v7 }
 0x2f1   : > { %1653 = vpow.bf16 %v1557_v8 }
 0x2f9   : > { %v1648_v9 = vpop.eup %1647 }
 0x2fa   : > { %v1650_v12 = vpop.eup %1649  ;;  %v930_v13 = vadd.bf16 1065369472, %v1648_v9 }
 0x2fb   : > { %v1652_v14 = vpop.eup %1651  ;;  %v932_v15 = vadd.bf16 1065369472, %v1650_v12 }
 0x2fc   : > { %v1654_v16 = vpop.eup %1653  ;;  %1655 = vrcp.bf16 %v930_v13  ;;  %v931_v17 = vadd.bf16 1065369472, %v1652_v14 }
 0x2fd   : > { %1657 = vrcp.bf16 %v932_v15  ;;  %v933_v18 = vadd.bf16 1065369472, %v1654_v16 }
 0x2fe   : > { %1659 = vrcp.bf16 %v931_v17 }
 0x2ff   : > { %1661 = vrcp.bf16 %v933_v18 }
 0x307   : > { %v1656_v19 = vpop.eup %1655 }
 0x308   : > { %v1658_v20 = vpop.eup %1657  ;;  %v935_v21 = vmul.bf16 1065369472, %v1656_v19 }
 0x309   : > { %v1660_v22 = vpop.eup %1659  ;;  %v939_v23 = vmul.bf16 1065369472, %v1658_v20 }
 0x30a   : > { %v1662_v24 = vpop.eup %1661  ;;  %v942_v25 = vmul.bf16 %v935_v21, %v910_v58  ;;  %v937_v26 = vmul.bf16 1065369472, %v1660_v22 }
 0x30b   : > { %v944_v27 = vmul.bf16 %v939_v23, %v912_v62  ;;  %v941_v28 = vmul.bf16 1065369472, %v1662_v24 }
 0x30c   : > { %v946_v29 = vadd.bf16 %v942_v25, %v1841_v48  ;;  %v943_v30 = vmul.bf16 %v937_v26, %v911_v63  ;;  %v950_v48 = vld [vmem:[%s1956_s7] sm:$0x3] }
 0x30d   : > { %v948_v31 = vadd.bf16 %v944_v27, %v1843_v50  ;;  %v945_v32 = vmul.bf16 %v941_v28, %v913_v3  ;;  %v1070_v50 = vld [vmem:[%s1958_s9] sm:$0x3] }
 0x30e   : > { %v947_v33 = vadd.bf16 %v943_v30, %v1845_v52  ;;  %v961_v34 = vsel %vm675_vm2, %v946_v29, 0  ;;  %v1179_v25 = vld [vmem:[%s1961_s12] sm:$0xf] }
 0x30f   : > { %v949_v35 = vadd.bf16 %v945_v32, %v1849_v54  ;;  %v967_v36 = vsel %vm675_vm2, %v948_v31, 0  ;;  %v1178_v31 = vld [vmem:[%s1960_s11] sm:$0xf] }
 0x310   : > { %1558 = vmatprep.subr.msk.bf16.mxu0 %vm675_vm2, %v947_v33 }
 0x311   : > { %1560 = vmatprep.subr.msk.bf16.mxu1 %vm675_vm2, %v949_v35  ;;  %973 = vmatpush1.bf16.msra.mxu0 %v961_v34 }
 0x312   : > { %1014 = vmatpush1.bf16.msra.mxu1 %v967_v36  ;;  %1562 = vmatprep.subr.msk.bf16.mxu0 %vm533_vm0, %v1815_v5  ;;  %v955_v5 = vpop.permute.xlu0 %954 }
 0x313   : > { %1564 = vmatprep.subr.msk.bf16.mxu1 %vm533_vm0, %v1817_v6 }
 0x314   : > { %1559 = vmatmul.mubr.msk.bf16.vlgmr.msra.gmra.mrb[12].mxu0 %vm671_vm3, %v950_v48 }
 0x315   : > { %1561 = vmatmul.mubr.msk.bf16.vlgmr.msra.gmra.mrb[12].mxu1 %vm671_vm3, %v950_v48  ;;  %1081 = vmatpush1.bf16.msra.mxu0 %v1827_v10 }
 0x316   : > { %1122 = vmatpush1.bf16.msra.mxu1 %v1830_v11  ;;  %1112 = vmatprep.mubr.bf16.mxu0 %v1703_v0 }
 0x317   : > { %1153 = vmatprep.mubr.bf16.mxu1 %v1703_v0 }
 0x31c   : > { %1563 = vmatmul.mubr.msk.bf16.vlgmr.msra.gmra.mrb[16].mxu0 %vm529_vm1, %v1070_v50 }
 0x31d   : > { %1565 = vmatmul.mubr.msk.bf16.vlgmr.msra.gmra.mrb[16].mxu1 %vm529_vm1, %v1070_v50  ;;  %1227 = vmatprep.mubr.bf16.mxu0 %v1703_v0 }
 0x31e   : > { %1268 = vmatprep.mubr.bf16.mxu1 %v1703_v0 }
 0x3e7   : > { %v1006_v6 = vpop.f32.mrb[12].mxu0 }
 0x3e8   : > { %v1047_v10 = vpop.f32.mrb[12].mxu1  ;;  %v1008_v11 = vpop.f32.mrb[13].mxu0  ;;  %v1007_v52 = vadd.f32 %v1006_v6, %v955_v5 }
 0x3e9   : > { %v1049_v54 = vpop.f32.mrb[13].mxu1  ;;  %v1010_v37 = vpop.f32.mrb[14].mxu0  ;;  %v1048_v38 = vadd.f32 %v1047_v10, %v955_v5  ;;  %v1009_v41 = vadd.f32 %v1008_v11, %v955_v5 }
 0x3ea   : > { %v1051_v39 = vpop.f32.mrb[14].mxu1  ;;  %v1011_v40 = vpop.f32.mrb[15].mxu0  ;;  %v1054_v43 = vpack.c.bf16 %v1007_v52, %v1007_v52  ;;  %v1050_v45 = vadd.f32 %v1049_v54, %v955_v5 }
 0x3eb   : > { %v1052_v42 = vpop.f32.mrb[15].mxu1  ;;  %v1056_v44 = vpack.c.bf16 %v1048_v38, %v1048_v38  ;;  %v1055_v47 = vpack.c.bf16 %v1009_v41, %v1009_v41  ;;  %v1378_v6 = vpop.permute.xlu1 %1377 }
 0x3ec   : > { %vm1058_vm4 = vcmp.gt.bf16.partialorder %v1054_v43, 0  ;;  %v1062_v56 = vmul.bf16 1036860877, %v1054_v43  ;;  %v1057_v61 = vpack.c.bf16 %v1050_v45, %v1050_v45 }
 0x3ed   : > { %vm1060_vm5 = vcmp.gt.bf16.partialorder %v1056_v44, 0  ;;  %v1064_v3 = vmul.bf16 1036860877, %v1056_v44  ;;  %vm1059_vm6 = vcmp.gt.bf16.partialorder %v1055_v47, 0  ;;  %v1063_v9 = vmul.bf16 1036860877, %v1055_v47 }
 0x3ee   : > { %v1065_v16 = vmul.bf16 1036860877, %v1057_v61  ;;  %vm1061_vm11 = vcmp.gt.bf16.partialorder %v1057_v61, 0  ;;  %v1066_v26 = vsel %vm1058_vm4, %v1054_v43, %v1062_v56 }
 0x3ef   : > { %v1114_v49 = vpop.f32.mrb[16].mxu0  ;;  %v1067_v24 = vsel %vm1059_vm6, %v1055_v47, %v1063_v9  ;;  %v1068_v28 = vsel %vm1060_vm5, %v1056_v44, %v1064_v3  ;;  %v1281_v29 = vsel %vm675_vm2, %v1066_v26, 0 }
 0x3f0   : > { %v1115_v51 = vadd.f32 %v1114_v49, %v1075_v46  ;;  %v1155_v53 = vpop.f32.mrb[16].mxu1  ;;  %v1116_v55 = vpop.f32.mrb[17].mxu0  ;;  %v1069_v27 = vsel %vm1061_vm11, %v1057_v61, %v1065_v16  ;;  %v1287_v30 = vsel %vm675_vm2, %v1068_v28, 0 }
 0x3f1   : > { %v1156_v57 = vadd.f32 %v1155_v53, %v1075_v46  ;;  %v1117_v58 = vadd.f32 %v1116_v55, %v1075_v46  ;;  %v1157_v59 = vpop.f32.mrb[17].mxu1  ;;  %v1118_v60 = vpop.f32.mrb[18].mxu0 }
 0x3f2   : > { %v1162_v62 = vpack.c.bf16 %v1115_v51, %v1115_v51  ;;  %v1158_v63 = vadd.f32 %v1157_v59, %v1075_v46  ;;  %v1159_v1 = vpop.f32.mrb[18].mxu1  ;;  %v1119_v2 = vpop.f32.mrb[19].mxu0 }
 0x3f3   : > { %v1164_v4 = vpack.c.bf16 %v1156_v57, %v1156_v57  ;;  %v1163_v7 = vpack.c.bf16 %v1117_v58, %v1117_v58  ;;  %v1160_v8 = vpop.f32.mrb[19].mxu1 }
 0x3f4   : > { %vm1166_vm7 = vcmp.gt.bf16.partialorder %v1162_v62, 0  ;;  %v1170_v12 = vmul.bf16 1036860877, %v1162_v62  ;;  %v1165_v13 = vpack.c.bf16 %v1158_v63, %v1158_v63 }
 0x3f5   : > { %vm1168_vm8 = vcmp.gt.bf16.partialorder %v1164_v4, 0  ;;  %v1172_v14 = vmul.bf16 1036860877, %v1164_v4  ;;  %vm1167_vm9 = vcmp.gt.bf16.partialorder %v1163_v7, 0  ;;  %v1171_v15 = vmul.bf16 1036860877, %v1163_v7 }
 0x3f6   : > { %vm1169_vm10 = vcmp.gt.bf16.partialorder %v1165_v13, 0  ;;  %v1173_v17 = vmul.bf16 1036860877, %v1165_v13  ;;  %v1174_v18 = vsel %vm1166_vm7, %v1162_v62, %v1170_v12 }
 0x3f7   : > { %v1175_v19 = vsel %vm1167_vm9, %v1163_v7, %v1171_v15  ;;  %v1184_v20 = vsel %vm675_vm2, %v1174_v18, 0  ;;  %v1176_v21 = vsel %vm1168_vm8, %v1164_v4, %v1172_v14 }
 0x3f8   : > { %1566 = vmatprep.subr.msk.bf16.mxu0 %vm675_vm2, %v1175_v19  ;;  %v1177_v22 = vsel %vm1169_vm10, %v1165_v13, %v1173_v17  ;;  %v1190_v23 = vsel %vm675_vm2, %v1176_v21, 0 }
 0x3f9   : > { %1568 = vmatprep.subr.msk.bf16.mxu1 %vm675_vm2, %v1177_v22  ;;  %1196 = vmatpush1.bf16.msra.mxu0 %v1184_v20 }
 0x3fa   : > { %1237 = vmatpush1.bf16.msra.mxu1 %v1190_v23  ;;  %1570 = vmatprep.subr.msk.bf16.mxu0 %vm675_vm2, %v1067_v24 }
 0x3fb   : > { %1572 = vmatprep.subr.msk.bf16.mxu1 %vm675_vm2, %v1069_v27 }
 0x3fc   : > { %1567 = vmatmul.mubr.msk.bf16.vlgmr.msra.gmra.mrb[20].mxu0 %vm671_vm3, %v1179_v25 }
 0x3fd   : > { %1569 = vmatmul.mubr.msk.bf16.vlgmr.msra.gmra.mrb[20].mxu1 %vm671_vm3, %v1179_v25  ;;  %1293 = vmatpush1.bf16.msra.mxu0 %v1281_v29 }
 0x3fe   : > { %1334 = vmatpush1.bf16.msra.mxu1 %v1287_v30  ;;  %1324 = vmatprep.mubr.bf16.mxu0 %v1703_v0 }
 0x3ff   : > { %1365 = vmatprep.mubr.bf16.mxu1 %v1703_v0 }
 0x404   : > { %1571 = vmatmul.mubr.msk.bf16.vlgmr.msra.gmra.mrb[24].mxu0 %vm671_vm3, %v1178_v31 }
 0x405   : > { %1573 = vmatmul.mubr.msk.bf16.vlgmr.msra.gmra.mrb[24].mxu1 %vm671_vm3, %v1178_v31 }
 0x4cf   : > { %v1229_v32 = vpop.f32.mrb[20].mxu0 }
 0x4d0   : > { %v1270_v33 = vpop.f32.mrb[20].mxu1  ;;  %v1231_v34 = vpop.f32.mrb[21].mxu0 }
 0x4d1   : > { %v1272_v35 = vpop.f32.mrb[21].mxu1  ;;  %v1233_v36 = vpop.f32.mrb[22].mxu0 }
 0x4d2   : > { %v1274_v48 = vpop.f32.mrb[22].mxu1  ;;  %v1234_v50 = vpop.f32.mrb[23].mxu0 }
 0x4d3   : > { %v1275_v5 = vpop.f32.mrb[23].mxu1 }
 0x4d7   : > { %v1326_v10 = vpop.f32.mrb[24].mxu0 }
 0x4d8   : > { %v1327_v11 = vadd.f32 %v1326_v10, %v1229_v32  ;;  %v1367_v0 = vpop.f32.mrb[24].mxu1  ;;  %v1328_v52 = vpop.f32.mrb[25].mxu0 }
 0x4d9   : > { %v1368_v54 = vadd.f32 %v1367_v0, %v1270_v33  ;;  %v1329_v37 = vadd.f32 %v1328_v52, %v1231_v34  ;;  %v1369_v38 = vpop.f32.mrb[25].mxu1  ;;  %v1330_v39 = vpop.f32.mrb[26].mxu0 }
 0x4da   : > { %v1380_v40 = vadd.f32 %v1378_v6, %v1327_v11  ;;  %v1370_v41 = vadd.f32 %v1369_v38, %v1272_v35  ;;  %v1371_v42 = vpop.f32.mrb[26].mxu1  ;;  %v1331_v43 = vpop.f32.mrb[27].mxu0 }
 0x4db   : > { %v1382_v44 = vadd.f32 %v1378_v6, %v1368_v54  ;;  %v1381_v45 = vadd.f32 %v1378_v6, %v1329_v37  ;;  %v1372_v46 = vpop.f32.mrb[27].mxu1 }
 0x4dc   : > { %v1384_v47 = vpack.c.bf16 %v1380_v40, %v1380_v40  ;;  %v1383_v49 = vadd.f32 %v1378_v6, %v1370_v41 }
 0x4dd   : > { %v1386_v51 = vpack.c.bf16 %v1382_v44, %v1382_v44  ;;  %v1385_v53 = vpack.c.bf16 %v1381_v45, %v1381_v45 }
 0x4de   : > { %v1574_v55 = vmul.bf16 3216621497, %v1384_v47  ;;  %v1387_v56 = vpack.c.bf16 %v1383_v49, %v1383_v49 }
 0x4df   : > { %v1576_v57 = vmul.bf16 3216621497, %v1386_v51  ;;  %v1575_v58 = vmul.bf16 3216621497, %v1385_v53 }
 0x4e0   : > { %1663 = vpow.bf16 %v1574_v55  ;;  %v1577_v59 = vmul.bf16 3216621497, %v1387_v56 }
 0x4e1   : > { %1665 = vpow.bf16 %v1576_v57 }
 0x4e2   : > { %1667 = vpow.bf16 %v1575_v58 }
 0x4e3   : > { %1669 = vpow.bf16 %v1577_v59 }
 0x4eb   : > { %v1664_v60 = vpop.eup %1663 }
 0x4ec   : > { %v1666_v61 = vpop.eup %1665  ;;  %v1404_v62 = vadd.bf16 1065369472, %v1664_v60 }
 0x4ed   : > { %v1668_v63 = vpop.eup %1667  ;;  %v1406_v1 = vadd.bf16 1065369472, %v1666_v61 }
 0x4ee   : > { %v1670_v2 = vpop.eup %1669  ;;  %1671 = vrcp.bf16 %v1404_v62  ;;  %v1405_v3 = vadd.bf16 1065369472, %v1668_v63 }
 0x4ef   : > { %1673 = vrcp.bf16 %v1406_v1  ;;  %v1407_v4 = vadd.bf16 1065369472, %v1670_v2 }
 0x4f0   : > { %1675 = vrcp.bf16 %v1405_v3 }
 0x4f1   : > { %1677 = vrcp.bf16 %v1407_v4 }
 0x4f9   : > { %v1672_v7 = vpop.eup %1671 }
 0x4fa   : > { %v1674_v8 = vpop.eup %1673  ;;  %v1409_v9 = vmul.bf16 1065369472, %v1672_v7 }
 0x4fb   : > { %v1676_v12 = vpop.eup %1675  ;;  %v1413_v13 = vmul.bf16 1065369472, %v1674_v8 }
 0x4fc   : > { %v1678_v14 = vpop.eup %1677  ;;  %v1416_v15 = vmul.bf16 %v1409_v9, %v1384_v47  ;;  %v1411_v16 = vmul.bf16 1065369472, %v1676_v12 }
 0x4fd   : > { %v1418_v17 = vmul.bf16 %v1413_v13, %v1386_v51  ;;  %v1415_v18 = vmul.bf16 1065369472, %v1678_v14 }
 0x4fe   : > { %v1417_v19 = vmul.bf16 %v1411_v16, %v1385_v53 }
 0x4ff   : > { %v1419_v20 = vmul.bf16 %v1415_v18, %v1387_v56 }
 0x500   : > { %v1578_v21 = vcombine.low %v1416_v15, %v1417_v19 }
 0x501   : > { %v1579_v22 = vcombine.low %v1418_v17, %v1419_v20 }
 0x502   : > { %1432 = vst [vmem:[%s505_s27] sm:$0xff] %v1578_v21 }
 0x503   : > { %1433 = vst [vmem:[%s505_s27 + $0x8] sm:$0xff] %v1579_v22 }
 0x504 PF: > { %s24_s15 = sadd.s32 1, %s1701_s15   ;;  %s1964_s29 = smov %s1697_s30 }
 0x505   : > { %p21_p5 = scmp.ge.s32.totalorder %s24_s15, 4   ;;  %s1965_s30 = smov %s1967_s16 }
 0x507   :  { %23 = sbr.rel (!%p21_p5) target bundleno = 2 (0x2), region = 106 }

</bundles_post_ra>
